<compile_context>
chip_gen: v7x
topology: tpu7x:2x2x1
jax: 0.10.0
libtpu: 0.0.40
codegen_flags: <defaults>
</compile_context>

<pallas_src>
import functools

import jax
import jax.numpy as jnp
from jax.experimental import pallas as pl
from jax.experimental.pallas import tpu as pltpu


def _round_up(n, m):
    return ((n + m - 1) // m) * m


def _cdiv(a, b):
    return -(-a // b)


def _pick_batch_tile(batch, block_b):
    """Batch tile: multiple of 16 (bf16 sublane packing).  For batches larger
    than one tile, keep an EVEN number of grid steps so the 'parallel' batch
    axis can shard across v7x's two TensorCores."""
    b16 = _round_up(batch, 16)
    if b16 <= block_b:
        return b16                      # single tile, grid == 1
    steps = _cdiv(b16, block_b)
    if steps % 2:
        steps += 1                      # even grid -> both v7x TCs get work
    return _round_up(_cdiv(b16, steps), 16)


def actor_kernel(x_ref, w1_ref, vec_ref, w2_ref, w3_ref, out_ref, *, act_dim):
    # vec rows: 0 = b1, 1 = b2, 2 = b3, 3 = action_scale, 4 = action_bias
    # (rows 2..4 occupy lanes [0:act_dim]; padding lanes are never read).
    # fc1 + relu  (bf16 operands, f32 accumulation on the MXU)
    x = x_ref[...].astype(jnp.bfloat16)
    h1 = jnp.dot(x, w1_ref[...], preferred_element_type=jnp.float32)
    h1 = jnp.maximum(h1 + vec_ref[0:1, :], 0.0)
    # fc2 + relu
    h2 = jnp.dot(h1.astype(jnp.bfloat16), w2_ref[...],
                 preferred_element_type=jnp.float32)
    h2 = jnp.maximum(h2 + vec_ref[1:2, :], 0.0)
    # fc_mu + tanh, then rescale to the action range.
    mu = jnp.dot(h2.astype(jnp.bfloat16), w3_ref[...],
                 preferred_element_type=jnp.float32)
    mu = jnp.tanh(mu + vec_ref[2:3, 0:act_dim])
    # Narrow (act_dim-wide) store; out block's last dim == full array dim.
    out_ref[...] = mu * vec_ref[3:4, 0:act_dim] + vec_ref[4:5, 0:act_dim]


@functools.partial(jax.jit, static_argnames=("act_dim", "block_b"))
def actor_forward(x, w1, vec, w2, w3, *, act_dim, block_b=512):
    """x: [B, obs_dim] f32 -> [B, act_dim] f32."""
    B, obs_dim = x.shape
    H = w1.shape[1]

    TB = _pick_batch_tile(B, block_b)
    Bp = _round_up(B, TB)
    if Bp != B:
        x = jnp.pad(x, ((0, Bp - B), (0, 0)))

    # Weights / packed vectors have constant index_maps: fetched once, so a
    # single buffer suffices (no dead double-buffer VMEM).
    resident = dict(pipeline_mode=pl.Buffered(1))

    out = pl.pallas_call(
        functools.partial(actor_kernel, act_dim=act_dim),
        out_shape=jax.ShapeDtypeStruct((Bp, act_dim), jnp.float32),
        grid_spec=pltpu.PrefetchScalarGridSpec(
            num_scalar_prefetch=0,
            grid=(Bp // TB,),
            in_specs=[
                pl.BlockSpec((TB, obs_dim), lambda i: (i, 0)),             # x (batch-tiled)
                pl.BlockSpec((obs_dim, H), lambda i: (0, 0), **resident),  # w1 bf16
                pl.BlockSpec((5, H), lambda i: (0, 0), **resident),        # packed vectors
                pl.BlockSpec((H, H), lambda i: (0, 0), **resident),        # w2 bf16
                pl.BlockSpec((H, act_dim), lambda i: (0, 0), **resident),  # w3 bf16
            ],
            out_specs=pl.BlockSpec((TB, act_dim), lambda i: (i, 0)),
        ),
        compiler_params=pltpu.CompilerParams(
            dimension_semantics=("parallel",)),
    )(x, w1, vec, w2, w3)

    # Only a cheap row-slice (no column slice) when B was padded up to TB.
    return out if Bp == B else out[:B]


def init_actor_params(key, obs_dim, act_dim, hidden=256,
                      action_low=-1.0, action_high=1.0):
    """Deterministic synthetic init matching PyTorch Linear fan-in scaling,
    stored transposed as [in, out] (f32 master copies)."""
    ks = jax.random.split(key, 6)
    s1 = 1.0 / jnp.sqrt(obs_dim)
    s2 = 1.0 / jnp.sqrt(hidden)
    w1 = jax.random.uniform(ks[0], (obs_dim, hidden), jnp.float32, -s1, s1)
    b1 = jax.random.uniform(ks[1], (hidden,), jnp.float32, -s1, s1)
    w2 = jax.random.uniform(ks[2], (hidden, hidden), jnp.float32, -s2, s2)
    b2 = jax.random.uniform(ks[3], (hidden,), jnp.float32, -s2, s2)
    w3 = jax.random.uniform(ks[4], (hidden, act_dim), jnp.float32, -s2, s2)
    b3 = jax.random.uniform(ks[5], (act_dim,), jnp.float32, -s2, s2)
    action_scale = jnp.full((act_dim,), (action_high - action_low) / 2.0,
                            jnp.float32)
    action_bias = jnp.full((act_dim,), (action_high + action_low) / 2.0,
                           jnp.float32)
    return (w1, b1, w2, b2, w3, b3, action_scale, action_bias)


def pack_actor_params(raw_params):
    """One-time packing: bf16 weights ([in, out] layout) and all five small
    vectors fused into a single [5, hidden] f32 array
    (rows: b1, b2, b3, action_scale, action_bias; rows 2..4 in lanes
    [0:act_dim], remaining lanes zero and never read by the kernel)."""
    w1, b1, w2, b2, w3, b3, action_scale, action_bias = raw_params
    hidden = int(w1.shape[1])
    act_dim = int(w3.shape[1])
    assert act_dim <= hidden
    vec = (jnp.zeros((5, hidden), jnp.float32)
           .at[0, :].set(b1)
           .at[1, :].set(b2)
           .at[2, :act_dim].set(b3)
           .at[3, :act_dim].set(action_scale)
           .at[4, :act_dim].set(action_bias))
    return (w1.astype(jnp.bfloat16), vec, w2.astype(jnp.bfloat16),
            w3.astype(jnp.bfloat16), act_dim)


def actor_reference_f32(x, raw_params):
    """Pure-JAX f32 reference matching the PyTorch forward."""
    w1, b1, w2, b2, w3, b3, scale, bias = raw_params
    h1 = jax.nn.relu(x @ w1 + b1)
    h2 = jax.nn.relu(h1 @ w2 + b2)
    mu = jnp.tanh(h2 @ w3 + b3)
    return mu * scale + bias


def actor_reference_bf16(x, raw_params):
    """Reference emulating the kernel's bf16-operand / f32-accumulate math."""
    w1, b1, w2, b2, w3, b3, scale, bias = raw_params
    bf = lambda a: a.astype(jnp.bfloat16).astype(jnp.float32)
    h1 = jax.nn.relu(jnp.dot(bf(x), bf(w1)) + b1)
    h2 = jax.nn.relu(jnp.dot(bf(h1), bf(w2)) + b2)
    mu = jnp.tanh(jnp.dot(bf(h2), bf(w3)) + b3)
    return mu * scale + bias


if __name__ == "__main__":
    key = jax.random.PRNGKey(0)
    k_param, k_x = jax.random.split(key)

    B, OBS_DIM, ACT_DIM, HIDDEN = 8, 16, 8, 256

    raw = init_actor_params(k_param, OBS_DIM, ACT_DIM, HIDDEN,
                            action_low=-2.0, action_high=2.0)
    w1, vec, w2, w3, act_dim = pack_actor_params(raw)
    x = jax.random.normal(k_x, (B, OBS_DIM), jnp.float32)

    out = actor_forward(x, w1, vec, w2, w3, act_dim=act_dim)
    out = jax.block_until_ready(out)

    assert out.shape == (B, ACT_DIM)
    # Tight check vs. a reference that emulates the kernel's bf16 math.
    ref_bf16 = actor_reference_bf16(x, raw)
    assert jnp.allclose(out, ref_bf16, atol=5e-3, rtol=5e-3)
    # Loose sanity check vs. the true f32 PyTorch-equivalent forward
    # (bf16 weights through two 256-wide contractions -> ~1e-2 level error).
    ref_f32 = actor_reference_f32(x, raw)
    assert jnp.allclose(out, ref_f32, atol=5e-2, rtol=5e-2)

    print("KERNEL_OK")
</pallas_src>

<mosaic_0001>
module attributes {stable_mosaic.version = 11 : i64} {
  func.func @actor_kernel(%arg0: i32, %arg1: memref<16x16xf32, #tpu.memory_space<vmem>>, %arg2: memref<16x256xbf16, #tpu.memory_space<vmem>>, %arg3: memref<5x256xf32, #tpu.memory_space<vmem>>, %arg4: memref<256x256xbf16, #tpu.memory_space<vmem>>, %arg5: memref<256x8xbf16, #tpu.memory_space<vmem>>, %arg6: memref<16x8xf32, #tpu.memory_space<vmem>>) attributes {dimension_semantics = [#tpu.dimension_semantics<parallel>], iteration_bounds = array<i64: 1>, scalar_prefetch = 0 : i64, scratch_operands = 0 : i64, tpu.core_type = #tpu.core_type<tc>, window_params = [{transform_indices = @transform_0, window_bounds = array<i64: 16, 16>}, {pipeline_mode = #tpu.pipeline_mode<synchronous>, transform_indices = @transform_1, window_bounds = array<i64: 16, 256>}, {pipeline_mode = #tpu.pipeline_mode<synchronous>, transform_indices = @transform_2, window_bounds = array<i64: 5, 256>}, {pipeline_mode = #tpu.pipeline_mode<synchronous>, transform_indices = @transform_3, window_bounds = array<i64: 256, 256>}, {pipeline_mode = #tpu.pipeline_mode<synchronous>, transform_indices = @transform_4, window_bounds = array<i64: 256, 8>}, {transform_indices = @transform_5, window_bounds = array<i64: 16, 8>}]} {
    %c0 = arith.constant 0 : index
    %c0_0 = arith.constant 0 : index
    %0 = vector.load %arg1[%c0, %c0_0] : memref<16x16xf32, #tpu.memory_space<vmem>>, vector<16x16xf32>
    %1 = arith.truncf %0 : vector<16x16xf32> to vector<16x16xbf16>
    %c0_1 = arith.constant 0 : index
    %c0_2 = arith.constant 0 : index
    %2 = vector.load %arg2[%c0_1, %c0_2] : memref<16x256xbf16, #tpu.memory_space<vmem>>, vector<16x256xbf16>
    %cst = arith.constant dense<0.000000e+00> : vector<16x256xf32>
    %3 = tpu.matmul %1, %2, %cst {dimension_numbers = #tpu.dot_dimension_numbers<[1], [0], [0], [1], [0, 0, 1, 1], [], []>} : vector<16x16xbf16>, vector<16x256xbf16>, vector<16x256xf32> -> vector<16x256xf32>
    %c0_3 = arith.constant 0 : index
    %c0_4 = arith.constant 0 : index
    %4 = vector.load %arg3[%c0_3, %c0_4] : memref<5x256xf32, #tpu.memory_space<vmem>>, vector<1x256xf32>
    %5 = vector.broadcast %4 : vector<1x256xf32> to vector<16x256xf32>
    %6 = arith.addf %3, %5 : vector<16x256xf32>
    %cst_5 = arith.constant 0.000000e+00 : f32
    %7 = vector.broadcast %cst_5 : f32 to vector<16x256xf32>
    %8 = arith.maximumf %6, %7 : vector<16x256xf32>
    %9 = arith.truncf %8 : vector<16x256xf32> to vector<16x256xbf16>
    %c0_6 = arith.constant 0 : index
    %c0_7 = arith.constant 0 : index
    %10 = vector.load %arg4[%c0_6, %c0_7] : memref<256x256xbf16, #tpu.memory_space<vmem>>, vector<256x256xbf16>
    %cst_8 = arith.constant dense<0.000000e+00> : vector<16x256xf32>
    %11 = tpu.matmul %9, %10, %cst_8 {dimension_numbers = #tpu.dot_dimension_numbers<[1], [0], [0], [1], [0, 0, 1, 1], [], []>} : vector<16x256xbf16>, vector<256x256xbf16>, vector<16x256xf32> -> vector<16x256xf32>
    %c1 = arith.constant 1 : index
    %c0_9 = arith.constant 0 : index
    %12 = vector.load %arg3[%c1, %c0_9] : memref<5x256xf32, #tpu.memory_space<vmem>>, vector<1x256xf32>
    %13 = vector.broadcast %12 : vector<1x256xf32> to vector<16x256xf32>
    %14 = arith.addf %11, %13 : vector<16x256xf32>
    %cst_10 = arith.constant 0.000000e+00 : f32
    %15 = vector.broadcast %cst_10 : f32 to vector<16x256xf32>
    %16 = arith.maximumf %14, %15 : vector<16x256xf32>
    %17 = arith.truncf %16 : vector<16x256xf32> to vector<16x256xbf16>
    %c0_11 = arith.constant 0 : index
    %c0_12 = arith.constant 0 : index
    %18 = vector.load %arg5[%c0_11, %c0_12] : memref<256x8xbf16, #tpu.memory_space<vmem>>, vector<256x8xbf16>
    %cst_13 = arith.constant dense<0.000000e+00> : vector<16x8xf32>
    %19 = tpu.matmul %17, %18, %cst_13 {dimension_numbers = #tpu.dot_dimension_numbers<[1], [0], [0], [1], [0, 0, 1, 1], [], []>} : vector<16x256xbf16>, vector<256x8xbf16>, vector<16x8xf32> -> vector<16x8xf32>
    %c2 = arith.constant 2 : index
    %c0_14 = arith.constant 0 : index
    %20 = vector.load %arg3[%c2, %c0_14] : memref<5x256xf32, #tpu.memory_space<vmem>>, vector<1x8xf32>
    %21 = vector.broadcast %20 : vector<1x8xf32> to vector<16x8xf32>
    %22 = arith.addf %19, %21 : vector<16x8xf32>
    %23 = math.tanh %22 : vector<16x8xf32>
    %c3 = arith.constant 3 : index
    %c0_15 = arith.constant 0 : index
    %24 = vector.load %arg3[%c3, %c0_15] : memref<5x256xf32, #tpu.memory_space<vmem>>, vector<1x8xf32>
    %25 = vector.broadcast %24 : vector<1x8xf32> to vector<16x8xf32>
    %26 = arith.mulf %23, %25 : vector<16x8xf32>
    %c4 = arith.constant 4 : index
    %c0_16 = arith.constant 0 : index
    %27 = vector.load %arg3[%c4, %c0_16] : memref<5x256xf32, #tpu.memory_space<vmem>>, vector<1x8xf32>
    %28 = vector.broadcast %27 : vector<1x8xf32> to vector<16x8xf32>
    %29 = arith.addf %26, %28 : vector<16x8xf32>
    %c0_17 = arith.constant 0 : index
    %c0_18 = arith.constant 0 : index
    %30 = vector.load %arg6[%c0_17, %c0_18] : memref<16x8xf32, #tpu.memory_space<vmem>>, vector<16x8xf32>
    tpu.vector_store %arg6[%c0_17, %c0_18], %29 {strides = array<i32>} : memref<16x8xf32, #tpu.memory_space<vmem>>, vector<16x8xf32>,
    return
  }
  func.func @transform_0(%arg0: i32) -> (i32, i32) {
    %c0_i32 = arith.constant 0 : i32
    %c0_i32_0 = arith.constant 0 : i32
    return %arg0, %c0_i32 : i32, i32
  }
  func.func @transform_1(%arg0: i32) -> (i32, i32) {
    %c0_i32 = arith.constant 0 : i32
    %c0_i32_0 = arith.constant 0 : i32
    %c0_i32_1 = arith.constant 0 : i32
    return %c0_i32, %c0_i32_0 : i32, i32
  }
  func.func @transform_2(%arg0: i32) -> (i32, i32) {
    %c0_i32 = arith.constant 0 : i32
    %c0_i32_0 = arith.constant 0 : i32
    %c0_i32_1 = arith.constant 0 : i32
    return %c0_i32, %c0_i32_0 : i32, i32
  }
  func.func @transform_3(%arg0: i32) -> (i32, i32) {
    %c0_i32 = arith.constant 0 : i32
    %c0_i32_0 = arith.constant 0 : i32
    %c0_i32_1 = arith.constant 0 : i32
    return %c0_i32, %c0_i32_0 : i32, i32
  }
  func.func @transform_4(%arg0: i32) -> (i32, i32) {
    %c0_i32 = arith.constant 0 : i32
    %c0_i32_0 = arith.constant 0 : i32
    %c0_i32_1 = arith.constant 0 : i32
    return %c0_i32, %c0_i32_0 : i32, i32
  }
  func.func @transform_5(%arg0: i32) -> (i32, i32) {
    %c0_i32 = arith.constant 0 : i32
    %c0_i32_0 = arith.constant 0 : i32
    return %arg0, %c0_i32 : i32, i32
  }
}

</mosaic_0001>

<bundles_post_ra>
// kernel: actor_forward.1
= control target key start
LH: loop header
LB: loop body
LE: loop exit
PB: predicated region body
PF: predicated region fallthrough
CT: control target
= control target key end

     0   :  { %10 = vsyncpa [#allocation3], 0  ;;  %s728_s18 = smov [#allocation2]   ;;  %s855_s0 = inlined_call_operand.vmem [shape: f32[16,16], index: 0, kind: input, shape index: {}]   ;;  %s856_s1 = inlined_call_operand.vmem [shape: bf16[16,256], index: 1, kind: input, shape index: {}]   ;;  %s857_s2 = inlined_call_operand.vmem [shape: f32[5,256], index: 2, kind: input, shape index: {}]   ;;  %s858_s3 = inlined_call_operand.hbm [shape: bf16[256,256], index: 3, kind: input, shape index: {}]   ;;  %s859_s4 = inlined_call_operand.vmem [shape: bf16[256,8], index: 4, kind: input, shape index: {}]   ;;  %s860_s5 = inlined_call_operand.vmem [shape: f32[16,8], index: 5, kind: output, shape index: {}]  }
   0x1   :  { %s22_s19 = sshll.u32 %s728_s18, 4  ;;  %s704_s22 = scalar_lea.hbm %s858_s3, 4096  ;;  %s23_s19 = int_to_ptr.vmem [resolvable:$true] %s22_s19 }
   0x2   :  { %p705_p0 = scmp.ne.s32.totalorder %s858_s3, %s704_s22  ;;  %p708_p1 = scmp.lt.u32.totalorder %s704_s22, %s858_s3 }
   0x4   :  { %p710_p2 = pnand %p708_p1, %p705_p0 }
   0x6   :  { %713 = shalt.err (!%p710_p2)
}
   0x7   :  { %s714_s27 = scalar_lea.vmem %s23_s19, 4096  ;;  %p719_p4 = scmp.lt.s32.totalorder %s23_s19, %s23_s19 }
   0x8   :  { %p715_p3 = scmp.ne.s32.totalorder %s23_s19, %s714_s27  ;;  %p720_p5 = scmp.lt.s32.totalorder %s714_s27, %s714_s27 }
   0xa   :  { %p721_p6 = por %p720_p5, %p719_p4 }
   0xc   :  { %p722_p7 = pnand %p721_p6, %p715_p3 }
   0xe   :  { %725 = shalt.err (!%p722_p7)
}
   0xf   :  { %s729_s28 = smov 128   ;;  %s730_s29 = smov 8  }
  0x10   :  { %28 = dma.hbm_to_vmem [thread:$0]  %s858_s3, 4096, %s23_s19, [#allocation3], %s729_s28, %s729_s28, %s730_s29  }
  0x11   :  { %726 = dma.done.wait [#allocation3], 4096  }
  0x12   :  { %727 = vsyncadd [#allocation3], 4294963200  ;;  %v731_v0 = vmov 0   ;;  %v633_v1 = vld [vmem:[%s856_s1 + $0x4] ss:$8 sps:$4 sm:$0xff]   ;;  %vm62_vm0 = vcmask 130048   ;;  %v42_v49 = vlaneseq }
  0x13   :  { %98 = vmatprep.mubr.bf16.mxu0 %v731_v0  ;;  %v635_v2 = vld [vmem:[%s856_s1] ss:$8 sps:$4 sm:$0xff]   ;;  %66 = vmatprep.subr.bf16.mxu0 %v633_v1  ;;  %v636_v6 = vld [vmem:[#allocation2 + $0x4] ss:$8 sps:$4 sm:$0xff]   ;;  %v638_v7 = vld [vmem:[#allocation2] ss:$8 sps:$4 sm:$0xff]  }
  0x14   :  { %v35_v3 = vld [vmem:[%s855_s0] sm:$0xff]  ;;  %v36_v4 = vld [vmem:[%s855_s0 + $0x8] sm:$0xff]  ;;  %67 = vmatpush1.bf16.msra.mxu0 %v635_v2  ;;  %320 = vmatprep.subr.bf16.mxu1 %v636_v6  ;;  %v642_v10 = vld [vmem:[#allocation2 + $0x24] ss:$8 sps:$4 sm:$0xff]   ;;  %v43_v50 = vshrl.u32 %v42_v49, 7  ;;  %vm547_vm1 = vcmask 64512  }
  0x15   :  { %v37_v5 = vpack.c.bf16 %v36_v4, %v35_v3  ;;  %v639_v8 = vld [vmem:[#allocation2 + $0x14] ss:$8 sps:$4 sm:$0xff]   ;;  %321 = vmatpush1.bf16.msra.mxu1 %v638_v7  ;;  %v641_v9 = vld [vmem:[#allocation2 + $0x10] ss:$8 sps:$4 sm:$0xff]   ;;  %v644_v11 = vld [vmem:[#allocation2 + $0x20] ss:$8 sps:$4 sm:$0xff]  }
  0x16   :  { %322 = vmatprep.subr.bf16.mxu1 %v639_v8  ;;  %v645_v12 = vld [vmem:[#allocation2 + $0x34] ss:$8 sps:$4 sm:$0xff]   ;;  %v647_v13 = vld [vmem:[#allocation2 + $0x30] ss:$8 sps:$4 sm:$0xff]   ;;  %v648_v14 = vld [vmem:[#allocation2 + $0x44] ss:$8 sps:$4 sm:$0xff]  }
  0x17   :  { %557 = vmatmul.mubr.msk.bf16.vlgmr.msra.gmra.mrb[0].mxu0 %vm62_vm0, %v37_v5  ;;  %v650_v15 = vld [vmem:[#allocation2 + $0x40] ss:$8 sps:$4 sm:$0xff]   ;;  %v651_v16 = vld [vmem:[#allocation2 + $0x54] ss:$8 sps:$4 sm:$0xff]   ;;  %v653_v17 = vld [vmem:[#allocation2 + $0x50] ss:$8 sps:$4 sm:$0xff]  }
  0x18   :  { %v654_v18 = vld [vmem:[#allocation2 + $0x64] ss:$8 sps:$4 sm:$0xff]   ;;  %v656_v19 = vld [vmem:[#allocation2 + $0x60] ss:$8 sps:$4 sm:$0xff]   ;;  %v657_v20 = vld [vmem:[#allocation2 + $0x74] ss:$8 sps:$4 sm:$0xff]  }
  0x19   :  { %323 = vmatpush1.bf16.msra.mxu1 %v641_v9  ;;  %v659_v21 = vld [vmem:[#allocation2 + $0x70] ss:$8 sps:$4 sm:$0xff]   ;;  %v660_v22 = vld [vmem:[#allocation2 + $0x84] ss:$8 sps:$4 sm:$0xff]   ;;  %v662_v23 = vld [vmem:[#allocation2 + $0x80] ss:$8 sps:$4 sm:$0xff]  }
  0x1a   :  { %324 = vmatprep.subr.bf16.mxu1 %v642_v10  ;;  %v663_v24 = vld [vmem:[#allocation2 + $0x94] ss:$8 sps:$4 sm:$0xff]   ;;  %v665_v25 = vld [vmem:[#allocation2 + $0x90] ss:$8 sps:$4 sm:$0xff]   ;;  %v666_v26 = vld [vmem:[#allocation2 + $0xa4] ss:$8 sps:$4 sm:$0xff]  }
  0x1b   :  { %v668_v27 = vld [vmem:[#allocation2 + $0xa0] ss:$8 sps:$4 sm:$0xff]   ;;  %v669_v28 = vld [vmem:[#allocation2 + $0xb4] ss:$8 sps:$4 sm:$0xff]   ;;  %v671_v29 = vld [vmem:[#allocation2 + $0xb0] ss:$8 sps:$4 sm:$0xff]  }
  0x1c   :  { %v672_v30 = vld [vmem:[#allocation2 + $0xc4] ss:$8 sps:$4 sm:$0xff]   ;;  %v674_v31 = vld [vmem:[#allocation2 + $0xc0] ss:$8 sps:$4 sm:$0xff]   ;;  %v675_v32 = vld [vmem:[#allocation2 + $0xd4] ss:$8 sps:$4 sm:$0xff]  }
  0x1d   :  { %325 = vmatpush1.bf16.msra.mxu1 %v644_v11  ;;  %v677_v33 = vld [vmem:[#allocation2 + $0xd0] ss:$8 sps:$4 sm:$0xff]   ;;  %v678_v34 = vld [vmem:[#allocation2 + $0xe4] ss:$8 sps:$4 sm:$0xff]   ;;  %v680_v35 = vld [vmem:[#allocation2 + $0xe0] ss:$8 sps:$4 sm:$0xff]  }
  0x1e   :  { %326 = vmatprep.subr.bf16.mxu1 %v645_v12  ;;  %v681_v36 = vld [vmem:[#allocation2 + $0xf4] ss:$8 sps:$4 sm:$0xff]   ;;  %v683_v37 = vld [vmem:[#allocation2 + $0xf0] ss:$8 sps:$4 sm:$0xff]   ;;  %v688_v42 = vld [vmem:[%s859_s4 + $0x50] sm:$0xff]   ;;  %v44_v51 = vsub.s32 0, %v43_v50 }
  0x1f   :  { %v684_v38 = vld [vmem:[%s859_s4 + $0x40] sm:$0xff]   ;;  %v686_v40 = vld [vmem:[%s859_s4 + $0x48] sm:$0xff]   ;;  %v689_v43 = vld [vmem:[%s859_s4 + $0x10] sm:$0xff]   ;;  %v48_v53 = vsub.s32 1, %v43_v50 }
  0x20   :  { %v685_v39 = vld [vmem:[%s859_s4] sm:$0xff]   ;;  %607 = vmatprep.subr.bf16.mxu0 %v684_v38  ;;  %v687_v41 = vld [vmem:[%s859_s4 + $0x8] sm:$0xff]   ;;  %v690_v44 = vld [vmem:[%s859_s4 + $0x58] sm:$0xff]  }
  0x21   :  { %327 = vmatpush1.bf16.msra.mxu1 %v647_v13  ;;  %608 = vmatpush3.bf16.msra.mxu0 %v685_v39  ;;  %v691_v45 = vld [vmem:[%s859_s4 + $0x18] sm:$0xff]   ;;  %v692_v46 = vld [vmem:[%s859_s4 + $0x60] sm:$0xff]   ;;  %v694_v48 = vld [vmem:[%s859_s4 + $0x68] sm:$0xff]  }
  0x22   :  { %328 = vmatprep.subr.bf16.mxu1 %v648_v14  ;;  %609 = vmatprep.subr.bf16.mxu0 %v686_v40  ;;  %v693_v47 = vld [vmem:[%s859_s4 + $0x20] sm:$0xff]   ;;  %v695_v6 = vld [vmem:[%s859_s4 + $0x28] sm:$0xff]   ;;  %v696_v7 = vld [vmem:[%s859_s4 + $0x70] sm:$0xff]  }
  0x23   :  { %v40_v52 = vld [vmem:[%s857_s2] ss:$8 sm:$0x3]  ;;  %v697_v8 = vld [vmem:[%s859_s4 + $0x30] sm:$0xff]   ;;  %v698_v9 = vld [vmem:[%s859_s4 + $0x78] sm:$0xff]  }
  0x24   :  { %v45_v54 = vrot.slane %v40_v52, %v44_v51  ;;  %v49_v55 = vrot.slane %v40_v52, %v48_v53  ;;  %v699_v10 = vld [vmem:[%s859_s4 + $0x38] sm:$0xff]   ;;  %v558_v11 = vld [vmem:[%s857_s2 + $0x1] ss:$8 sm:$0x3]  ;;  %v544_v39 = vld [vmem:[%s857_s2 + $0x4] ss:$0 sm:$0xff] }
  0x25   :  { %329 = vmatpush1.bf16.msra.mxu1 %v650_v15  ;;  %610 = vmatpush3.bf16.msra.mxu0 %v687_v41  ;;  %v153_v12 = vrot.slane %v558_v11, %v44_v51  ;;  %v157_v13 = vrot.slane %v558_v11, %v48_v53 }
  0x26   :  { %330 = vmatprep.subr.bf16.mxu1 %v651_v16  ;;  %611 = vmatprep.subr.bf16.mxu0 %v688_v42 }
  0x29   :  { %331 = vmatpush1.bf16.msra.mxu1 %v653_v17  ;;  %612 = vmatpush3.bf16.msra.mxu0 %v689_v43 }
  0x2a   :  { %332 = vmatprep.subr.bf16.mxu1 %v654_v18  ;;  %613 = vmatprep.subr.bf16.mxu0 %v690_v44 }
  0x2d   :  { %333 = vmatpush1.bf16.msra.mxu1 %v656_v19  ;;  %614 = vmatpush3.bf16.msra.mxu0 %v691_v45 }
  0x2e   :  { %334 = vmatprep.subr.bf16.mxu1 %v657_v20  ;;  %615 = vmatprep.subr.bf16.mxu0 %v692_v46 }
  0x31   :  { %335 = vmatpush1.bf16.msra.mxu1 %v659_v21  ;;  %616 = vmatpush3.bf16.msra.mxu0 %v693_v47 }
  0x32   :  { %336 = vmatprep.subr.bf16.mxu1 %v660_v22  ;;  %617 = vmatprep.subr.bf16.mxu0 %v694_v48 }
  0x35   :  { %337 = vmatpush1.bf16.msra.mxu1 %v662_v23  ;;  %618 = vmatpush3.bf16.msra.mxu0 %v695_v6 }
  0x36   :  { %338 = vmatprep.subr.bf16.mxu1 %v663_v24  ;;  %619 = vmatprep.subr.bf16.mxu0 %v696_v7 }
  0x39   :  { %339 = vmatpush1.bf16.msra.mxu1 %v665_v25  ;;  %620 = vmatpush3.bf16.msra.mxu0 %v697_v8 }
  0x3a   :  { %340 = vmatprep.subr.bf16.mxu1 %v666_v26  ;;  %621 = vmatprep.subr.bf16.mxu0 %v698_v9 }
  0x3d   :  { %341 = vmatpush1.bf16.msra.mxu1 %v668_v27  ;;  %622 = vmatpush3.bf16.msra.mxu0 %v699_v10 }
  0x3e   :  { %342 = vmatprep.subr.bf16.mxu1 %v669_v28 }
  0x41   :  { %343 = vmatpush1.bf16.msra.mxu1 %v671_v29  ;;  %v401_v29 = vld [vmem:[%s857_s2 + $0x2] ss:$0 sm:$0xff] }
  0x42   :  { %344 = vmatprep.subr.bf16.mxu1 %v672_v30 }
  0x45   :  { %345 = vmatpush1.bf16.msra.mxu1 %v674_v31 }
  0x46   :  { %346 = vmatprep.subr.bf16.mxu1 %v675_v32 }
  0x49   :  { %347 = vmatpush1.bf16.msra.mxu1 %v677_v33 }
  0x4a   :  { %348 = vmatprep.subr.bf16.mxu1 %v678_v34 }
  0x4d   :  { %349 = vmatpush1.bf16.msra.mxu1 %v680_v35 }
  0x4e   :  { %350 = vmatprep.subr.bf16.mxu1 %v681_v36 }
  0x51   :  { %351 = vmatpush1.bf16.msra.mxu1 %v683_v37  ;;  %v541_v37 = vld [vmem:[%s857_s2 + $0x3] ss:$0 sm:$0xff] }
  0xea   :  { %v100_v56 = vpop.f32.mrb[0].mxu0 }
  0xeb   :  { %v101_v57 = vadd.f32 %v100_v56, %v45_v54  ;;  %v102_v58 = vpop.f32.mrb[1].mxu0 }
  0xec   :  { %v103_v59 = vadd.f32 %v102_v58, %v49_v55  ;;  %v104_v60 = vpop.f32.mrb[2].mxu0 }
  0xed   :  { %v105_v61 = vadd.f32 %v104_v60, %v45_v54  ;;  %v106_v62 = vpop.f32.mrb[3].mxu0  ;;  %v109_v0 = vmax.f32 %v101_v57, 0.0 }
  0xee   :  { %v107_v63 = vadd.f32 %v106_v62, %v49_v55  ;;  %v110_v2 = vmax.f32 %v103_v59, 0.0 }
  0xef   :  { %v111_v1 = vmax.f32 %v105_v61, 0.0 }
  0xf0   :  { %v112_v3 = vmax.f32 %v107_v63, 0.0 }
  0xf1   :  { %v113_v4 = vpack.c.bf16 %v111_v1, %v109_v0 }
  0xf2   :  { %v114_v5 = vpack.c.bf16 %v112_v3, %v110_v2 }
  0xf4   :  { %352 = vmatprep.mubr.bf16.mxu1 %v114_v5 }
  0xf5   :  { %353 = vmatmul.mubr.bf16.vlgmr.msra.gmra.mrb[0].mxu1 %v113_v4 }
 0x1c8   :  { %v354_v14 = vpop.f32.mrb[0].mxu1 }
 0x1c9   :  { %v355_v15 = vadd.f32 %v354_v14, %v153_v12  ;;  %v356_v16 = vpop.f32.mrb[1].mxu1 }
 0x1ca   :  { %v357_v17 = vadd.f32 %v356_v16, %v157_v13  ;;  %v358_v18 = vpop.f32.mrb[2].mxu1 }
 0x1cb   :  { %v359_v19 = vadd.f32 %v358_v18, %v153_v12  ;;  %v360_v20 = vpop.f32.mrb[3].mxu1  ;;  %v363_v22 = vmax.f32 %v355_v15, 0.0 }
 0x1cc   :  { %v361_v21 = vadd.f32 %v360_v20, %v157_v13  ;;  %v364_v24 = vmax.f32 %v357_v17, 0.0 }
 0x1cd   :  { %v365_v23 = vmax.f32 %v359_v19, 0.0 }
 0x1ce   :  { %v366_v25 = vmax.f32 %v361_v21, 0.0 }
 0x1cf   :  { %v367_v26 = vpack.c.bf16 %v365_v23, %v363_v22 }
 0x1d0   :  { %v368_v27 = vpack.c.bf16 %v366_v25, %v364_v24 }
 0x1d2   :  { %530 = vmatprep.mubr.bf16.mxu0 %v368_v27 }
 0x1d3   :  { %531 = vmatmul.mubr.bf16.vlgmr.msra.gmra.mrb[4].mxu0 %v367_v26 }
 0x2a6   :  { %v623_v28 = vpop.f32.mrb[4].mxu0 }
 0x2a7   :  { %v624_v30 = vpop.f32.mrb[5].mxu0 }
 0x2a8   :  { %v625_v31 = vadd.f32 %v624_v30, %v623_v28  ;;  %v626_v32 = vpop.f32.mrb[6].mxu0 }
 0x2a9   :  { %v627_v33 = vpop.f32.mrb[7].mxu0 }
 0x2aa   :  { %v533_v34 = vadd.f32 %v625_v31, %v401_v29  ;;  %v628_v35 = vadd.f32 %v627_v33, %v626_v32 }
 0x2ac   :  { %700 = vtanh.f32 %v533_v34  ;;  %v536_v36 = vadd.f32 %v628_v35, %v401_v29 }
 0x2ae   :  { %702 = vtanh.f32 %v536_v36 }
 0x2b6   :  { %v701_v38 = vpop.eup %700 }
 0x2b7   :  { %v542_v40 = vmul.f32 %v701_v38, %v541_v37 }
 0x2b8   :  { %v703_v41 = vpop.eup %702 }
 0x2b9   :  { %v545_v42 = vadd.f32 %v544_v39, %v542_v40  ;;  %v543_v43 = vmul.f32 %v703_v41, %v541_v37 }
 0x2bb   :  { %548 = vst.msk [vmem:[%s860_s5] sm:$0xff] %vm547_vm1, %v545_v42  ;;  %v546_v44 = vadd.f32 %v544_v39, %v543_v43 }
 0x2bd   :  { %549 = vst.msk [vmem:[%s860_s5 + $0x8] sm:$0xff] %vm547_vm1, %v546_v44 }
 0x2be   :  { %554 = vsyncpa [#allocation3], 1 }

</bundles_post_ra>
